<compile_context>
chip_gen: v7x
topology: tpu7x:2x2x1
jax: 0.10.0
libtpu: 0.0.40
codegen_flags: <defaults>
</compile_context>

<pallas_src>
import functools

import jax
import jax.numpy as jnp
from jax.experimental import pallas as pl
from jax.experimental.pallas import tpu as pltpu


def _round_up(x, m):
    return (x + m - 1) // m * m


def _cdiv(a, b):
    return -(-a // b)


def _make_kernel(tap_offsets, rows_out):
    """Fused conv + eval-BN + ReLU over one row tile.

    x_ref : (SLAB_ROWS_PAD, CIN)      bf16  flattened zero-padded input slab
    w_ref : (K*K, CIN, COUT_PAD)      bf16  conv weights, tap-major (ky, kx)
    s_ref : (1, COUT_PAD)             f32   BN scale  gamma / sqrt(var + eps)
    b_ref : (1, COUT_PAD)             f32   BN bias   beta - mean * scale
    o_ref : (ROWS_OUT_PAD, COUT_PAD)  bf16  flat output rows (i = h*WP + w)
    """
    def kernel(x_ref, w_ref, s_ref, b_ref, o_ref):
        # In-kernel im2col: each tap is a statically shifted row window of the
        # flattened slab; accumulate K*K small MXU matmuls in f32.
        acc = None
        for t, off in enumerate(tap_offsets):
            lhs = x_ref[off:off + rows_out, :]                 # (rows_out, CIN) bf16
            part = jnp.dot(lhs, w_ref[t],                      # (CIN, COUT_PAD) bf16
                           preferred_element_type=jnp.float32)
            acc = part if acc is None else acc + part
        y = acc * s_ref[...] + b_ref[...]                      # eval-mode BatchNorm (f32)
        o_ref[...] = jnp.maximum(y, 0.0).astype(o_ref.dtype)   # ReLU, bf16 store
    return kernel


@functools.partial(jax.jit, static_argnames=("stride", "padding", "eps"))
def basic_conv_forward(x_nchw, weight_oihw, gamma, beta, running_mean, running_var,
                       *, stride=1, padding=0, eps=1e-5):
    """BasicConv forward: (N, CIN, H, W) -> (N, COUT, H_out, W_out), float32."""
    N, CIN, H, W = x_nchw.shape
    COUT, CIN_w, K, K2 = weight_oihw.shape
    assert CIN == CIN_w and K == K2

    HP, WP = H + 2 * padding, W + 2 * padding
    HO1, WO1 = HP - K + 1, WP - K + 1          # stride-1 output extent
    assert HO1 >= 1 and WO1 >= 1

    # ---- row tiling: TILE_H output rows per grid step ----------------------
    MAX_FLAT_ROWS = 2048                       # keeps in/out blocks ~0.5-2 MB
    tile_h = max(1, min(HO1, MAX_FLAT_ROWS // WP))
    num_tiles = _cdiv(HO1, tile_h)
    while N * num_tiles < 4 and tile_h > 1:    # >= 2 grid steps per TensorCore
        tile_h = _cdiv(tile_h, 2)
        num_tiles = _cdiv(HO1, tile_h)

    ROWS_OUT = tile_h * WP                     # flat rows per step (w >= WO1 are garbage)
    ROWS_OUT_PAD = _round_up(ROWS_OUT, 16)     # bf16 sublane packing
    MAX_TAP_OFF = (K - 1) * (WP + 1)
    SLAB_ROWS = (tile_h + K - 1) * WP
    SLAB_ROWS_PAD = _round_up(ROWS_OUT_PAD + MAX_TAP_OFF, 16)
    COUT_PAD = _round_up(COUT, 128)            # lane-dense (bf16) output
    G = N * num_tiles

    # ---- bf16 input slabs (no im2col in HBM) --------------------------------
    x_nhwc = jnp.transpose(x_nchw, (0, 2, 3, 1)).astype(jnp.bfloat16)
    h_needed = num_tiles * tile_h + K - 1      # padded rows consumed by the slabs
    x_pad = jnp.pad(x_nhwc, ((0, 0),
                             (padding, h_needed - H - padding),
                             (padding, padding),
                             (0, 0)))
    slabs = jnp.stack(
        [x_pad[:, t * tile_h: t * tile_h + tile_h + K - 1, :, :]
         for t in range(num_tiles)], axis=1)   # (N, T, tile_h+K-1, WP, CIN)
    slabs = slabs.reshape(N, num_tiles, SLAB_ROWS, CIN)
    slabs = jnp.pad(slabs, ((0, 0), (0, 0), (0, SLAB_ROWS_PAD - SLAB_ROWS), (0, 0)))
    slabs = slabs.reshape(G * SLAB_ROWS_PAD, CIN)

    # ---- weights / BatchNorm parameters -------------------------------------
    # OIHW -> (K*K, CIN, COUT), tap-major (ky, kx) to match tap_offsets order.
    w = jnp.transpose(weight_oihw, (2, 3, 1, 0)).reshape(K * K, CIN, COUT)
    w = jnp.pad(w, ((0, 0), (0, 0), (0, COUT_PAD - COUT))).astype(jnp.bfloat16)
    scale = (gamma / jnp.sqrt(running_var + eps)).astype(jnp.float32)
    bias = (beta - running_mean * scale).astype(jnp.float32)
    scale = jnp.pad(scale, (0, COUT_PAD - COUT)).reshape(1, COUT_PAD)
    bias = jnp.pad(bias, (0, COUT_PAD - COUT)).reshape(1, COUT_PAD)

    tap_offsets = tuple(ky * WP + kx for ky in range(K) for kx in range(K))
    kernel = _make_kernel(tap_offsets, ROWS_OUT_PAD)

    # Scoped-VMEM budget from the chosen block sizes (double buffers + acc).
    vmem_est = (2 * SLAB_ROWS_PAD * _round_up(CIN, 128) * 2      # input blocks
                + 2 * ROWS_OUT_PAD * COUT_PAD * 2                # output blocks
                + 2 * K * K * _round_up(CIN, 16) * COUT_PAD * 2  # weights
                + ROWS_OUT_PAD * COUT_PAD * 4                    # f32 accumulator
                + 4 * COUT_PAD * 4)                              # scale / bias
    vmem_limit = int(min(48 * 2 ** 20, max(16 * 2 ** 20, 2 * vmem_est)))

    out = pl.pallas_call(
        kernel,
        out_shape=jax.ShapeDtypeStruct((G * ROWS_OUT_PAD, COUT_PAD), jnp.bfloat16),
        grid_spec=pltpu.PrefetchScalarGridSpec(
            num_scalar_prefetch=0,
            grid=(G,),
            in_specs=[
                pl.BlockSpec((SLAB_ROWS_PAD, CIN), lambda g: (g, 0)),
                pl.BlockSpec((K * K, CIN, COUT_PAD), lambda g: (0, 0, 0)),
                pl.BlockSpec((1, COUT_PAD), lambda g: (0, 0)),
                pl.BlockSpec((1, COUT_PAD), lambda g: (0, 0)),
            ],
            out_specs=pl.BlockSpec((ROWS_OUT_PAD, COUT_PAD), lambda g: (g, 0)),
        ),
        compiler_params=pltpu.CompilerParams(
            dimension_semantics=("parallel",),
            vmem_limit_bytes=vmem_limit),
    )(slabs, w, scale, bias)

    # ---- drop garbage rows / padded lanes, back to NCHW (fused in this jit) --
    out = out.reshape(N, num_tiles, ROWS_OUT_PAD, COUT_PAD)[:, :, :ROWS_OUT, :]
    out = out.reshape(N, num_tiles, tile_h, WP, COUT_PAD)[:, :, :, :WO1, :COUT]
    out = out.reshape(N, num_tiles * tile_h, WO1, COUT)[:, :HO1]
    if stride > 1:
        # TODO(synk): computed at stride 1 and subsampled; a strided in-kernel
        # row slice would avoid the extra compute.
        out = out[:, ::stride, ::stride, :]
    return jnp.transpose(out, (0, 3, 1, 2)).astype(jnp.float32)


def _reference(x_nchw, weight_oihw, gamma, beta, running_mean, running_var,
               *, stride=1, padding=1, eps=1e-5):
    y = jax.lax.conv_general_dilated(
        x_nchw.astype(jnp.float32), weight_oihw.astype(jnp.float32),
        window_strides=(stride, stride),
        padding=[(padding, padding), (padding, padding)],
        dimension_numbers=("NCHW", "OIHW", "NCHW"))
    scale = (gamma / jnp.sqrt(running_var + eps)).reshape(1, -1, 1, 1)
    bias = (beta - running_mean * gamma / jnp.sqrt(running_var + eps)).reshape(1, -1, 1, 1)
    return jnp.maximum(y * scale + bias, 0.0)


if __name__ == "__main__":
    # BasicConv(in_planes=4, out_planes=8, kernel_size=3, stride=1, padding=1)
    N, CIN, H, W = 2, 4, 16, 16
    COUT, K = 8, 3

    key = jax.random.PRNGKey(0)
    k_x, k_w, k_g, k_b, k_m, k_v = jax.random.split(key, 6)

    x = jax.random.normal(k_x, (N, CIN, H, W), dtype=jnp.float32)
    weight = jax.random.normal(k_w, (COUT, CIN, K, K), dtype=jnp.float32) * 0.1
    gamma = 1.0 + 0.1 * jax.random.normal(k_g, (COUT,), dtype=jnp.float32)
    beta = 0.1 * jax.random.normal(k_b, (COUT,), dtype=jnp.float32)
    running_mean = 0.1 * jax.random.normal(k_m, (COUT,), dtype=jnp.float32)
    running_var = jnp.abs(jax.random.normal(k_v, (COUT,), dtype=jnp.float32)) + 0.5

    out = basic_conv_forward(x, weight, gamma, beta, running_mean, running_var,
                             stride=1, padding=1)
    out = jax.block_until_ready(out)

    ref = _reference(x, weight, gamma, beta, running_mean, running_var,
                     stride=1, padding=1)
    assert out.shape == (N, COUT, H, W), out.shape
    # bf16 matmul inputs + bf16 output store (f32 accumulation) -> loose tol.
    assert jnp.allclose(out, ref, atol=5e-2, rtol=5e-2), "mismatch vs. reference"

    print("KERNEL_OK")
</pallas_src>

<mosaic_0001>
module attributes {stable_mosaic.version = 11 : i64} {
  func.func @kernel(%arg0: i32, %arg1: memref<192x4xbf16, #tpu.memory_space<vmem>>, %arg2: memref<9x4x128xbf16, #tpu.memory_space<vmem>>, %arg3: memref<1x128xf32, #tpu.memory_space<vmem>>, %arg4: memref<1x128xf32, #tpu.memory_space<vmem>>, %arg5: memref<144x128xbf16, #tpu.memory_space<vmem>>) attributes {dimension_semantics = [#tpu.dimension_semantics<parallel>], iteration_bounds = array<i64: 4>, scalar_prefetch = 0 : i64, scratch_operands = 0 : i64, tpu.core_type = #tpu.core_type<tc>, window_params = [{transform_indices = @transform_0, window_bounds = array<i64: 192, 4>}, {pipeline_mode = #tpu.pipeline_mode<synchronous>, transform_indices = @transform_1, window_bounds = array<i64: 9, 4, 128>}, {pipeline_mode = #tpu.pipeline_mode<synchronous>, transform_indices = @transform_2, window_bounds = array<i64: 1, 128>}, {pipeline_mode = #tpu.pipeline_mode<synchronous>, transform_indices = @transform_3, window_bounds = array<i64: 1, 128>}, {transform_indices = @transform_4, window_bounds = array<i64: 144, 128>}]} {
    %c0 = arith.constant 0 : index
    %c0_0 = arith.constant 0 : index
    %0 = vector.load %arg1[%c0, %c0_0] : memref<192x4xbf16, #tpu.memory_space<vmem>>, vector<144x4xbf16>
    %c0_1 = arith.constant 0 : index
    %c0_2 = arith.constant 0 : index
    %c0_3 = arith.constant 0 : index
    %1 = vector.load %arg2[%c0_1, %c0_2, %c0_3] : memref<9x4x128xbf16, #tpu.memory_space<vmem>>, vector<1x4x128xbf16>
    %2 = vector.shape_cast %1 : vector<1x4x128xbf16> to vector<4x128xbf16>
    %cst = arith.constant dense<0.000000e+00> : vector<144x128xf32>
    %3 = tpu.matmul %0, %2, %cst {dimension_numbers = #tpu.dot_dimension_numbers<[1], [0], [0], [1], [0, 0, 1, 1], [], []>} : vector<144x4xbf16>, vector<4x128xbf16>, vector<144x128xf32> -> vector<144x128xf32>
    %c1 = arith.constant 1 : index
    %c0_4 = arith.constant 0 : index
    %4 = vector.load %arg1[%c1, %c0_4] : memref<192x4xbf16, #tpu.memory_space<vmem>>, vector<144x4xbf16>
    %c1_5 = arith.constant 1 : index
    %c0_6 = arith.constant 0 : index
    %c0_7 = arith.constant 0 : index
    %5 = vector.load %arg2[%c1_5, %c0_6, %c0_7] : memref<9x4x128xbf16, #tpu.memory_space<vmem>>, vector<1x4x128xbf16>
    %6 = vector.shape_cast %5 : vector<1x4x128xbf16> to vector<4x128xbf16>
    %cst_8 = arith.constant dense<0.000000e+00> : vector<144x128xf32>
    %7 = tpu.matmul %4, %6, %cst_8 {dimension_numbers = #tpu.dot_dimension_numbers<[1], [0], [0], [1], [0, 0, 1, 1], [], []>} : vector<144x4xbf16>, vector<4x128xbf16>, vector<144x128xf32> -> vector<144x128xf32>
    %8 = arith.addf %3, %7 : vector<144x128xf32>
    %c2 = arith.constant 2 : index
    %c0_9 = arith.constant 0 : index
    %9 = vector.load %arg1[%c2, %c0_9] : memref<192x4xbf16, #tpu.memory_space<vmem>>, vector<144x4xbf16>
    %c2_10 = arith.constant 2 : index
    %c0_11 = arith.constant 0 : index
    %c0_12 = arith.constant 0 : index
    %10 = vector.load %arg2[%c2_10, %c0_11, %c0_12] : memref<9x4x128xbf16, #tpu.memory_space<vmem>>, vector<1x4x128xbf16>
    %11 = vector.shape_cast %10 : vector<1x4x128xbf16> to vector<4x128xbf16>
    %cst_13 = arith.constant dense<0.000000e+00> : vector<144x128xf32>
    %12 = tpu.matmul %9, %11, %cst_13 {dimension_numbers = #tpu.dot_dimension_numbers<[1], [0], [0], [1], [0, 0, 1, 1], [], []>} : vector<144x4xbf16>, vector<4x128xbf16>, vector<144x128xf32> -> vector<144x128xf32>
    %13 = arith.addf %8, %12 : vector<144x128xf32>
    %c18 = arith.constant 18 : index
    %c0_14 = arith.constant 0 : index
    %14 = vector.load %arg1[%c18, %c0_14] : memref<192x4xbf16, #tpu.memory_space<vmem>>, vector<144x4xbf16>
    %c3 = arith.constant 3 : index
    %c0_15 = arith.constant 0 : index
    %c0_16 = arith.constant 0 : index
    %15 = vector.load %arg2[%c3, %c0_15, %c0_16] : memref<9x4x128xbf16, #tpu.memory_space<vmem>>, vector<1x4x128xbf16>
    %16 = vector.shape_cast %15 : vector<1x4x128xbf16> to vector<4x128xbf16>
    %cst_17 = arith.constant dense<0.000000e+00> : vector<144x128xf32>
    %17 = tpu.matmul %14, %16, %cst_17 {dimension_numbers = #tpu.dot_dimension_numbers<[1], [0], [0], [1], [0, 0, 1, 1], [], []>} : vector<144x4xbf16>, vector<4x128xbf16>, vector<144x128xf32> -> vector<144x128xf32>
    %18 = arith.addf %13, %17 : vector<144x128xf32>
    %c19 = arith.constant 19 : index
    %c0_18 = arith.constant 0 : index
    %19 = vector.load %arg1[%c19, %c0_18] : memref<192x4xbf16, #tpu.memory_space<vmem>>, vector<144x4xbf16>
    %c4 = arith.constant 4 : index
    %c0_19 = arith.constant 0 : index
    %c0_20 = arith.constant 0 : index
    %20 = vector.load %arg2[%c4, %c0_19, %c0_20] : memref<9x4x128xbf16, #tpu.memory_space<vmem>>, vector<1x4x128xbf16>
    %21 = vector.shape_cast %20 : vector<1x4x128xbf16> to vector<4x128xbf16>
    %cst_21 = arith.constant dense<0.000000e+00> : vector<144x128xf32>
    %22 = tpu.matmul %19, %21, %cst_21 {dimension_numbers = #tpu.dot_dimension_numbers<[1], [0], [0], [1], [0, 0, 1, 1], [], []>} : vector<144x4xbf16>, vector<4x128xbf16>, vector<144x128xf32> -> vector<144x128xf32>
    %23 = arith.addf %18, %22 : vector<144x128xf32>
    %c20 = arith.constant 20 : index
    %c0_22 = arith.constant 0 : index
    %24 = vector.load %arg1[%c20, %c0_22] : memref<192x4xbf16, #tpu.memory_space<vmem>>, vector<144x4xbf16>
    %c5 = arith.constant 5 : index
    %c0_23 = arith.constant 0 : index
    %c0_24 = arith.constant 0 : index
    %25 = vector.load %arg2[%c5, %c0_23, %c0_24] : memref<9x4x128xbf16, #tpu.memory_space<vmem>>, vector<1x4x128xbf16>
    %26 = vector.shape_cast %25 : vector<1x4x128xbf16> to vector<4x128xbf16>
    %cst_25 = arith.constant dense<0.000000e+00> : vector<144x128xf32>
    %27 = tpu.matmul %24, %26, %cst_25 {dimension_numbers = #tpu.dot_dimension_numbers<[1], [0], [0], [1], [0, 0, 1, 1], [], []>} : vector<144x4xbf16>, vector<4x128xbf16>, vector<144x128xf32> -> vector<144x128xf32>
    %28 = arith.addf %23, %27 : vector<144x128xf32>
    %c36 = arith.constant 36 : index
    %c0_26 = arith.constant 0 : index
    %29 = vector.load %arg1[%c36, %c0_26] : memref<192x4xbf16, #tpu.memory_space<vmem>>, vector<144x4xbf16>
    %c6 = arith.constant 6 : index
    %c0_27 = arith.constant 0 : index
    %c0_28 = arith.constant 0 : index
    %30 = vector.load %arg2[%c6, %c0_27, %c0_28] : memref<9x4x128xbf16, #tpu.memory_space<vmem>>, vector<1x4x128xbf16>
    %31 = vector.shape_cast %30 : vector<1x4x128xbf16> to vector<4x128xbf16>
    %cst_29 = arith.constant dense<0.000000e+00> : vector<144x128xf32>
    %32 = tpu.matmul %29, %31, %cst_29 {dimension_numbers = #tpu.dot_dimension_numbers<[1], [0], [0], [1], [0, 0, 1, 1], [], []>} : vector<144x4xbf16>, vector<4x128xbf16>, vector<144x128xf32> -> vector<144x128xf32>
    %33 = arith.addf %28, %32 : vector<144x128xf32>
    %c37 = arith.constant 37 : index
    %c0_30 = arith.constant 0 : index
    %34 = vector.load %arg1[%c37, %c0_30] : memref<192x4xbf16, #tpu.memory_space<vmem>>, vector<144x4xbf16>
    %c7 = arith.constant 7 : index
    %c0_31 = arith.constant 0 : index
    %c0_32 = arith.constant 0 : index
    %35 = vector.load %arg2[%c7, %c0_31, %c0_32] : memref<9x4x128xbf16, #tpu.memory_space<vmem>>, vector<1x4x128xbf16>
    %36 = vector.shape_cast %35 : vector<1x4x128xbf16> to vector<4x128xbf16>
    %cst_33 = arith.constant dense<0.000000e+00> : vector<144x128xf32>
    %37 = tpu.matmul %34, %36, %cst_33 {dimension_numbers = #tpu.dot_dimension_numbers<[1], [0], [0], [1], [0, 0, 1, 1], [], []>} : vector<144x4xbf16>, vector<4x128xbf16>, vector<144x128xf32> -> vector<144x128xf32>
    %38 = arith.addf %33, %37 : vector<144x128xf32>
    %c38 = arith.constant 38 : index
    %c0_34 = arith.constant 0 : index
    %39 = vector.load %arg1[%c38, %c0_34] : memref<192x4xbf16, #tpu.memory_space<vmem>>, vector<144x4xbf16>
    %c8 = arith.constant 8 : index
    %c0_35 = arith.constant 0 : index
    %c0_36 = arith.constant 0 : index
    %40 = vector.load %arg2[%c8, %c0_35, %c0_36] : memref<9x4x128xbf16, #tpu.memory_space<vmem>>, vector<1x4x128xbf16>
    %41 = vector.shape_cast %40 : vector<1x4x128xbf16> to vector<4x128xbf16>
    %cst_37 = arith.constant dense<0.000000e+00> : vector<144x128xf32>
    %42 = tpu.matmul %39, %41, %cst_37 {dimension_numbers = #tpu.dot_dimension_numbers<[1], [0], [0], [1], [0, 0, 1, 1], [], []>} : vector<144x4xbf16>, vector<4x128xbf16>, vector<144x128xf32> -> vector<144x128xf32>
    %43 = arith.addf %38, %42 : vector<144x128xf32>
    %c0_38 = arith.constant 0 : index
    %c0_39 = arith.constant 0 : index
    %44 = vector.load %arg3[%c0_38, %c0_39] : memref<1x128xf32, #tpu.memory_space<vmem>>, vector<1x128xf32>
    %45 = vector.broadcast %44 : vector<1x128xf32> to vector<144x128xf32>
    %46 = arith.mulf %43, %45 : vector<144x128xf32>
    %c0_40 = arith.constant 0 : index
    %c0_41 = arith.constant 0 : index
    %47 = vector.load %arg4[%c0_40, %c0_41] : memref<1x128xf32, #tpu.memory_space<vmem>>, vector<1x128xf32>
    %48 = vector.broadcast %47 : vector<1x128xf32> to vector<144x128xf32>
    %49 = arith.addf %46, %48 : vector<144x128xf32>
    %cst_42 = arith.constant 0.000000e+00 : f32
    %50 = vector.broadcast %cst_42 : f32 to vector<144x128xf32>
    %51 = arith.maximumf %49, %50 : vector<144x128xf32>
    %52 = arith.truncf %51 : vector<144x128xf32> to vector<144x128xbf16>
    %c0_43 = arith.constant 0 : index
    %c0_44 = arith.constant 0 : index
    %53 = vector.load %arg5[%c0_43, %c0_44] : memref<144x128xbf16, #tpu.memory_space<vmem>>, vector<144x128xbf16>
    tpu.vector_store %arg5[%c0_43, %c0_44], %52 {strides = array<i32>} : memref<144x128xbf16, #tpu.memory_space<vmem>>, vector<144x128xbf16>,
    return
  }
  func.func @transform_0(%arg0: i32) -> (i32, i32) {
    %c0_i32 = arith.constant 0 : i32
    %c0_i32_0 = arith.constant 0 : i32
    return %arg0, %c0_i32 : i32, i32
  }
  func.func @transform_1(%arg0: i32) -> (i32, i32, i32) {
    %c0_i32 = arith.constant 0 : i32
    %c0_i32_0 = arith.constant 0 : i32
    %c0_i32_1 = arith.constant 0 : i32
    %c0_i32_2 = arith.constant 0 : i32
    return %c0_i32, %c0_i32_0, %c0_i32_1 : i32, i32, i32
  }
  func.func @transform_2(%arg0: i32) -> (i32, i32) {
    %c0_i32 = arith.constant 0 : i32
    %c0_i32_0 = arith.constant 0 : i32
    %c0_i32_1 = arith.constant 0 : i32
    return %c0_i32, %c0_i32_0 : i32, i32
  }
  func.func @transform_3(%arg0: i32) -> (i32, i32) {
    %c0_i32 = arith.constant 0 : i32
    %c0_i32_0 = arith.constant 0 : i32
    %c0_i32_1 = arith.constant 0 : i32
    return %c0_i32, %c0_i32_0 : i32, i32
  }
  func.func @transform_4(%arg0: i32) -> (i32, i32) {
    %c0_i32 = arith.constant 0 : i32
    %c0_i32_0 = arith.constant 0 : i32
    return %arg0, %c0_i32 : i32, i32
  }
}

</mosaic_0001>

<bundles_post_ra>
// kernel: basic_conv_forward.1
= control target key start
LH: loop header
LB: loop body
LE: loop exit
PB: predicated region body
PF: predicated region fallthrough
CT: control target
= control target key end

     0   :  { %s3351_s15 = smov 0   ;;  %s4029_s0 = inlined_call_operand.vmem [shape: bf16[768,4], index: 0, kind: input, shape index: {}]   ;;  %s4030_s1 = inlined_call_operand.vmem [shape: bf16[9,4,128], index: 1, kind: input, shape index: {}]   ;;  %s4031_s2 = inlined_call_operand.vmem [shape: f32[1,128], index: 2, kind: input, shape index: {}]   ;;  %s4032_s3 = inlined_call_operand.vmem [shape: f32[1,128], index: 3, kind: input, shape index: {}]   ;;  %s4033_s4 = inlined_call_operand.vmem [shape: bf16[576,128], index: 4, kind: output, shape index: {}]  }
   0x1 LB: > { %s2343_s16 = sadd.s32 4294967295, %s3322_s15   ;;  %p2347_p0 = scmp.ge.s32.totalorder %s3322_s15, 1  ;;  %s3322_s15 = sphi %s3351_s15, %s14_s15  }
   0x2   : > { %p163_p1 = scmp.lt.s32.totalorder %s3322_s15, 5 }
   0x4   : > { %p164_p2 = pnand %p2347_p0, %p163_p1 }
   0x5   : > { %vm377_vm0 = vcmask (!%p164_p2), 1041408   ;;  %v2410_v0 = vld [vmem:[%s4030_s1 + $0x8] sm:$0x3] (!%p164_p2)  ;;  %v2350_v1 = vld [vmem:[%s4030_s1 + $0x2] sm:$0x3] (!%p164_p2)  ;;  %v3324_v2 = vmov (!%p164_p2), 0.0  }
   0x6   : > { %167 = sbr.rel (%p164_p2) target bundleno = 573 (0x23d), region = 36  ;;  %2809 = vmatprep.subr.bf16.mxu0 (!%p164_p2), %v3324_v2  ;;  %2657 = vmatprep.subr.bf16.mxu1 (!%p164_p2), %v3324_v2  ;;  %v3368_v3 = vsel (!%p164_p2), %vm377_vm0, %v2410_v0, 0  ;;  %v379_v4 = vsel (!%p164_p2), %vm377_vm0, %v2350_v1, 0  ;;  %vm3325_vm1 = vmmov (!%p164_p2), 0   ;;  %vm272_vm2 = vsmask.f32 (!%p164_p2), 7424 }
   0x7   : > { %s189_s21 = smul.u32 (!%p164_p2), 24, %s2343_s16  ;;  %2810 = vmatpush3.bf16.msra.mxu0 (!%p164_p2), %v3368_v3  ;;  %2658 = vmatpush3.bf16.msra.mxu1 (!%p164_p2), %v379_v4  ;;  %vm1038_vm3 = vsmask.f32 (!%p164_p2), 6400  ;;  %v220_v16 = vld [vmem:[%s4030_s1] sm:$0x3] (!%p164_p2)  ;;  %vm349_vm4 = vcmask (!%p164_p2), 31744  }
   0x8   : > { %2659 = vmatprep.mubr.msk.bf16.mxu1 (!%p164_p2), %vm3325_vm1, %v3324_v2  ;;  %2811 = vmatprep.mubr.msk.bf16.mxu0 (!%p164_p2), %vm3325_vm1, %v3324_v2  ;;  %v2421_v24 = vld [vmem:[%s4030_s1 + $0xa] sm:$0x3] (!%p164_p2)  ;;  %v505_v33 = vsel (!%p164_p2), %vm377_vm0, %v220_v16, 0  ;;  %vm1287_vm5 = vcmask (!%p164_p2), 1045504   ;;  %vm618_vm6 = vcmask (!%p164_p2), 1046528   ;;  %vm1956_vm8 = vcmask (!%p164_p2), 1044480  }
   0x9   : > { %p190_p3 = scmp.lt.s32.totalorder (!%p164_p2), %s189_s21, 95  ;;  %2847 = vmatprep.subr.bf16.mxu0 (!%p164_p2), %v3324_v2  ;;  %2695 = vmatprep.subr.bf16.mxu1 (!%p164_p2), %v3324_v2  ;;  %v1335_v41 = vsel (!%p164_p2), %vm377_vm0, %v2421_v24, 0  ;;  %vm1707_vm7 = vsmask.f32 (!%p164_p2), 5376  ;;  %s195_s14 = smul.u32 (!%p164_p2), 18, %s2343_s16 }
   0xb   : > { %p196_p4 = scmp.lt.s32.totalorder (!%p164_p2), %s195_s14, 71 }
   0xd   : > { %s4035_s21 = smov (!%p190_p3, %s189_s21), 95  ;;  %s4037_s14 = smov (!%p196_p4, %s195_s14), 71 }
   0xe   : > { %s2348_s22 = sshll.u32 %s4035_s21, 2  ;;  %s2349_s16 = sshll.u32 %s4037_s14, 2 }
   0xf   : > { %s3383_s25 = scalar_lea.vmem %s4029_s0, %s2348_s22  ;;  %s3981_s23 = scalar_lea.vmem %s4033_s4, %s2349_s16 }
  0x10   : > { %v202_v5 = vld [vmem:[%s3383_s25] sm:$0xf]  ;;  %v3387_v6 = vld [vmem:[%s3383_s25 + $0x4] sm:$0xf]  ;;  %v3393_v8 = vld [vmem:[%s3383_s25 + $0x8] sm:$0xff]  }
  0x11   : > { %v3390_v7 = vcombine.low %v202_v5, %v3387_v6  ;;  %v791_v9 = vld [vmem:[%s3383_s25 + $0x8] sm:$0xe]  ;;  %v3397_v10 = vld [vmem:[%s3383_s25 + $0xc] sm:$0xf]  ;;  %v281_v13 = vshll.u32 %v3393_v8, 16  ;;  %v3406_v15 = vld [vmem:[%s3383_s25 + $0x10] sm:$0xff]  }
  0x12   : > { %v3403_v14 = vcombine.low %v791_v9, %v3397_v10  ;;  %v3412_v17 = vld [vmem:[%s3383_s25 + $0x10] sm:$0xff]   ;;  %v1048_v22 = vshrl.u32 %v3406_v15, 16  ;;  %v1051_v23 = vshll.u32 %v3406_v15, 16  ;;  %v285_v25 = vshrl.u32 %v3393_v8, 16  ;;  %v3423_v26 = vld [vmem:[%s3383_s25 + $0x18] sm:$0xff]   ;;  %v3432_v40 = vld [vmem:[%s3383_s25 + $0x20] sm:$0xff]  }
  0x13   : > { %v274_v11 = vshrl.u32 %v3390_v7, 16  ;;  %v276_v12 = vshll.u32 %v3390_v7, 16  ;;  %v283_v19 = vrot.slane %v281_v13, 1  ;;  %v289_v30 = vshll.u32 %v3412_v17, 16  ;;  %v3438_v45 = vld [vmem:[%s3383_s25 + $0x18] sm:$0xff]   ;;  %v3454_v56 = vld [vmem:[%s3383_s25 + $0x28] sm:$0xff]  }
  0x14   : > { %v1040_v20 = vshrl.u32 %v3403_v14, 16  ;;  %v1043_v21 = vshll.u32 %v3403_v14, 16  ;;  %v1050_v31 = vrot.slane %v1048_v22, 1  ;;  %v1053_v32 = vrot.slane %v1051_v23, 2  ;;  %v3459_v59 = vld [vmem:[%s3383_s25 + $0x20] sm:$0xff]   ;;  %v3477_v16 = vld [vmem:[%s3383_s25 + $0x28] sm:$0xff]  }
  0x15   : > { %v278_v18 = vrot.slane %v276_v12, 1  ;;  %v1057_v34 = vshrl.u32 %v3423_v26, 16  ;;  %v1060_v37 = vshll.u32 %v3423_v26, 16  ;;  %v287_v42 = vor.u32 %v285_v25, %v283_v19 }
  0x16   : > { %v1042_v28 = vrot.slane %v1040_v20, 1  ;;  %v1045_v29 = vrot.slane %v1043_v21, 2  ;;  %v1054_v38 = vor.u32 %v1053_v32, %v1050_v31  ;;  %v291_v43 = vrot.slane %v289_v30, 1  ;;  %v3492_v30 = vld [vmem:[%s3383_s25 + $0x30] sm:$0xff]  }
  0x17   : > { %v279_v27 = vor.u32 %v278_v18, %v274_v11  ;;  %v1059_v39 = vrot.slane %v1057_v34, 1  ;;  %v1062_v44 = vrot.slane %v1060_v37, 2  ;;  %v1066_v48 = vshrl.u32 %v3432_v40, 16  ;;  %v3472_v11 = vld [vmem:[%s3383_s25 + $0x30] sm:$0xff]  }
  0x18   : > { %v1046_v36 = vor.u32 %v1045_v29, %v1042_v28  ;;  %v1069_v49 = vshll.u32 %v3432_v40, 16  ;;  %v292_v50 = vsel %vm272_vm2, %v287_v42, %v291_v43  ;;  %v293_v51 = vshrl.u32 %v3412_v17, 16 }
  0x19   : > { %v284_v35 = vsel %vm272_vm2, %v279_v27, %v283_v19  ;;  %v1063_v47 = vor.u32 %v1062_v44, %v1059_v39  ;;  %v297_v52 = vshll.u32 %v3438_v45, 16  ;;  %v1068_v54 = vrot.slane %v1066_v48, 1 }
  0x1a   : > { %2660 = vmatmul.mubr.msk.bf16.vlgmr.msra.gmra.mrb[0].mxu1 %vm349_vm4, %v284_v35  ;;  %v1055_v46 = vsel %vm1038_vm3, %v1046_v36, %v1054_v38  ;;  %v1071_v55 = vrot.slane %v1069_v49, 2  ;;  %v295_v57 = vor.u32 %v293_v51, %v291_v43  ;;  %v1075_v61 = vshrl.u32 %v3454_v56, 16  ;;  %v1281_v35 = vld [vmem:[%s3383_s25 + $0x8] sm:$0xc] }
  0x1b   : > { %2663 = vmatprep.mubr.msk.bf16.mxu1 %vm3325_vm1, %v3324_v2  ;;  %2696 = vmatpush3.bf16.msra.mxu1 %v505_v33  ;;  %v1064_v53 = vsel %vm1038_vm3, %v1054_v38, %v1063_v47  ;;  %v299_v58 = vrot.slane %v297_v52, 1  ;;  %v1078_v62 = vshll.u32 %v3454_v56, 16  ;;  %v301_v0 = vshrl.u32 %v3438_v45, 16  ;;  %v3528_v52 = vld [vmem:[%s3383_s25 + $0x40] sm:$0xff]  }
  0x1c   : > { %2733 = vmatprep.subr.bf16.mxu1 %v3324_v2  ;;  %2812 = vmatmul.mubr.msk.bf16.vlgmr.msra.gmra.mrb[0].mxu0 %vm349_vm4, %v1055_v46  ;;  %v1072_v60 = vor.u32 %v1071_v55, %v1068_v54  ;;  %v305_v1 = vshll.u32 %v3459_v59, 16  ;;  %v1077_v5 = vrot.slane %v1075_v61, 1  ;;  %v1084_v19 = vshrl.u32 %v3472_v11, 16 }
  0x1d   : > { %2848 = vmatpush3.bf16.msra.mxu0 %v1335_v41  ;;  %2815 = vmatprep.mubr.msk.bf16.mxu0 %vm3325_vm1, %v3324_v2  ;;  %v300_v63 = vsel %vm272_vm2, %v295_v57, %v299_v58  ;;  %v1080_v9 = vrot.slane %v1078_v62, 2  ;;  %v303_v12 = vor.u32 %v301_v0, %v299_v58  ;;  %v1087_v20 = vshll.u32 %v3472_v11, 16  ;;  %v3510_v41 = vld [vmem:[%s3383_s25 + $0x38] sm:$0xff]   ;;  %v3543_v62 = vld [vmem:[%s3383_s25 + $0x48] ss:$0 sps:$4 sm:$0x11]  }
  0x1e   : > { %2885 = vmatprep.subr.bf16.mxu0 %v3324_v2  ;;  %v1073_v4 = vsel %vm1038_vm3, %v1063_v47, %v1072_v60  ;;  %v307_v13 = vrot.slane %v305_v1, 1  ;;  %v309_v22 = vshrl.u32 %v3459_v59, 16  ;;  %v313_v23 = vshll.u32 %v3477_v16, 16  ;;  %v2432_v47 = vld [vmem:[%s4030_s1 + $0xc] sm:$0x3] }
  0x1f   : > { %v1081_v18 = vor.u32 %v1080_v9, %v1077_v5  ;;  %v1086_v25 = vrot.slane %v1084_v19, 1  ;;  %v1089_v27 = vrot.slane %v1087_v20, 2  ;;  %v317_v33 = vshrl.u32 %v3477_v16, 16  ;;  %v2379_v20 = vld [vmem:[%s4030_s1 + $0x4] sm:$0x3] }
  0x20   : > { %v308_v21 = vsel %vm272_vm2, %v303_v12, %v307_v13  ;;  %v311_v28 = vor.u32 %v309_v22, %v307_v13  ;;  %v315_v29 = vrot.slane %v313_v23, 1  ;;  %v321_v34 = vshll.u32 %v3492_v30, 16 }
  0x21   : > { %v1082_v24 = vsel %vm1038_vm3, %v1072_v60, %v1081_v18  ;;  %v3497_v31 = vor.u32 %v1089_v27, %v1086_v25  ;;  %v2422_v37 = vcombine.low %v1281_v35, %v3397_v10  ;;  %v1289_v43 = vrot.slane %v3406_v15, 2  ;;  %v3590_v27 = vld [vmem:[%s3383_s25 + $0x40] sm:$0xff]   ;;  %v3614_v35 = vld [vmem:[%s3383_s25 + $0x50] ss:$0 sps:$4 sm:$0x33]  }
  0x22   : > { %2664 = vmatmul.mubr.msk.bf16.gmra.mrb[4].mxu1 %vm349_vm4, %v292_v50  ;;  %v316_v32 = vsel %vm272_vm2, %v311_v28, %v315_v29  ;;  %v319_v38 = vor.u32 %v317_v33, %v315_v29  ;;  %v323_v39 = vrot.slane %v321_v34, 1  ;;  %v325_v10 = vshrl.u32 %v3492_v30, 16 }
  0x23   : > { %2667 = vmatprep.mubr.msk.bf16.mxu1 %vm3325_vm1, %v3324_v2  ;;  %v1091_v36 = vsel %vm1038_vm3, %v1081_v18, %v3497_v31  ;;  %v1288_v42 = vrot.slane %v2422_v37, 2  ;;  %v329_v46 = vshll.u32 %v3510_v41, 16  ;;  %v1576_v49 = vsel %vm377_vm0, %v2432_v47, 0  ;;  %v1460_v37 = vld [vmem:[%s3383_s25 + $0x10] sm:$0xc] }
  0x24   : > { %2816 = vmatmul.mubr.msk.bf16.gmra.mrb[4].mxu0 %vm349_vm4, %v1064_v53  ;;  %v324_v44 = vsel %vm272_vm2, %v319_v38, %v323_v39  ;;  %v327_v50 = vor.u32 %v325_v10, %v323_v39  ;;  %v1291_v53 = vrot.slane %v3423_v26, 2  ;;  %v333_v55 = vshrl.u32 %v3510_v41, 16  ;;  %v3624_v38 = vld [vmem:[%s3383_s25 + $0x14] sm:$0xf] }
  0x25   : > { %2819 = vmatprep.mubr.msk.bf16.mxu0 %vm3325_vm1, %v3324_v2  ;;  %v1290_v48 = vsel %vm1287_vm5, %v1288_v42, %v1289_v43  ;;  %v331_v51 = vrot.slane %v329_v46, 1  ;;  %v337_v57 = vshll.u32 %v3528_v52, 16  ;;  %v341_v1 = vshrl.u32 %v3528_v52, 16  ;;  %v2452_v46 = vld [vmem:[%s4030_s1 + $0xe] sm:$0x3] }
  0x26   : > { %v1292_v58 = vsel %vm1287_vm5, %v1289_v43, %v1291_v53  ;;  %v1295_v13 = vrot.slane %v3454_v56, 2  ;;  %v666_v22 = vsel %vm377_vm0, %v2379_v20, 0  ;;  %v1301_v28 = vrot.slane %v3590_v27, 2  ;;  %v3633_v43 = vld [vmem:[%s3383_s25 + $0x18] sm:$0xff]  }
  0x27   : > { %v332_v54 = vsel %vm272_vm2, %v327_v50, %v331_v51  ;;  %v335_v60 = vor.u32 %v333_v55, %v331_v51  ;;  %v339_v61 = vrot.slane %v337_v57, 1  ;;  %v3630_v42 = vcombine.low %v1460_v37, %v3624_v38  ;;  %v3675_v57 = vld [vmem:[%s3383_s25 + $0x30] sm:$0xff]  }
  0x28   : > { %v1530_v10 = vrot.slane %v3633_v43, 2  ;;  %v628_v37 = vrot.slane %v3477_v16, 1 }
  0x29   : > { %v340_v0 = vsel %vm272_vm2, %v335_v60, %v339_v61  ;;  %v343_v9 = vor.u32 %v341_v1, %v339_v61  ;;  %v1536_v60 = vrot.slane %v3675_v57, 2 }
  0x2a   : > { %2668 = vmatmul.mubr.msk.bf16.gmra.mrb[8].mxu1 %vm349_vm4, %v300_v63  ;;  %v1293_v63 = vrot.slane %v3432_v40, 2 }
  0x2b   : > { %2671 = vmatprep.mubr.msk.bf16.mxu1 %vm3325_vm1, %v3324_v2 }
  0x2c   : > { %2820 = vmatmul.mubr.msk.bf16.gmra.mrb[8].mxu0 %vm349_vm4, %v1073_v4  ;;  %v345_v4 = vshll.u32 %v3543_v62, 16  ;;  %v1294_v5 = vsel %vm1287_vm5, %v1291_v53, %v1293_v63  ;;  %v1296_v19 = vsel %vm1287_vm5, %v1293_v63, %v1295_v13  ;;  %v3663_v53 = vld [vmem:[%s3383_s25 + $0x28] sm:$0xff]  }
  0x2d   : > { %2823 = vmatprep.mubr.msk.bf16.mxu0 %vm3325_vm1, %v3324_v2 }
  0x2e   : > { %v347_v12 = vrot.slane %v345_v4, 1  ;;  %v620_v4 = vrot.slane %v3393_v8, 1 }
  0x30   : > { %v348_v18 = vsel %vm272_vm2, %v343_v9, %v347_v12 }
  0x32   : > { %2672 = vmatmul.mubr.msk.bf16.gmra.mrb[12].mxu1 %vm349_vm4, %v308_v21  ;;  %v1297_v21 = vrot.slane %v3472_v11, 2 }
  0x33   : > { %2675 = vmatprep.mubr.msk.bf16.mxu1 %vm3325_vm1, %v3324_v2 }
  0x34   : > { %2824 = vmatmul.mubr.msk.bf16.gmra.mrb[12].mxu0 %vm349_vm4, %v1082_v24  ;;  %v1298_v23 = vsel %vm1287_vm5, %v1295_v13, %v1297_v21  ;;  %v3577_v24 = vld [vmem:[%s3383_s25 + $0x38] sm:$0xff]   ;;  %v3706_v13 = vld [vmem:[%s3383_s25 + $0x40] sm:$0xff]  }
  0x35   : > { %2827 = vmatprep.mubr.msk.bf16.mxu0 %vm3325_vm1, %v3324_v2  ;;  %v1299_v25 = vrot.slane %v3577_v24, 2 }
  0x37   : > { %v1302_v29 = vsel %vm1287_vm5, %v1299_v25, %v1301_v28 }
  0x3a   : > { %2676 = vmatmul.mubr.msk.bf16.gmra.mrb[16].mxu1 %vm349_vm4, %v316_v32  ;;  %v3602_v32 = vld [vmem:[%s3383_s25 + $0x48] sm:$0xff]  }
  0x3b   : > { %2679 = vmatprep.mubr.msk.bf16.mxu1 %vm3325_vm1, %v3324_v2  ;;  %v1303_v33 = vrot.slane %v3602_v32, 2 }
  0x3c   : > { %2828 = vmatmul.mubr.msk.bf16.gmra.mrb[16].mxu0 %vm349_vm4, %v1091_v36  ;;  %v1305_v36 = vrot.slane %v3614_v35, 2 }
  0x3d   : > { %2849 = vmatprep.mubr.msk.bf16.mxu0 %vm3325_vm1, %v3324_v2  ;;  %v1304_v34 = vsel %vm1287_vm5, %v1301_v28, %v1303_v33  ;;  %v3733_v28 = vld [vmem:[%s3383_s25 + $0x50] sm:$0xff]  }
  0x3e   : > { %v1306_v39 = vsel %vm1287_vm5, %v1303_v33, %v1305_v36 }
  0x42   : > { %2680 = vmatmul.mubr.msk.bf16.gmra.mrb[20].mxu1 %vm349_vm4, %v324_v44  ;;  %v1529_v44 = vrot.slane %v3630_v42, 2 }
  0x43   : > { %2683 = vmatprep.mubr.msk.bf16.mxu1 %vm3325_vm1, %v3324_v2 }
  0x44   : > { %2850 = vmatmul.mubr.msk.bf16.vlgmr.msra.gmra.mrb[0].mxu0 %vm349_vm4, %v1290_v48  ;;  %v1531_v47 = vsel %vm1287_vm5, %v1529_v44, %v1530_v10  ;;  %v3649_v48 = vld [vmem:[%s3383_s25 + $0x20] sm:$0xff]   ;;  %v1712_v44 = vshll.u32 %v3630_v42, 16 }
  0x45   : > { %2886 = vmatpush3.bf16.msra.mxu0 %v1576_v49  ;;  %2853 = vmatprep.mubr.msk.bf16.mxu0 %vm3325_vm1, %v3324_v2  ;;  %v1825_v49 = vsel %vm377_vm0, %v2452_v46, 0  ;;  %v1532_v50 = vrot.slane %v3649_v48, 2  ;;  %v1720_v46 = vshll.u32 %v3633_v43, 16 }
  0x46   : > { %2923 = vmatprep.subr.bf16.mxu0 %v3324_v2 }
  0x47   : > { %v1533_v51 = vsel %vm1287_vm5, %v1530_v10, %v1532_v50  ;;  %v1717_v10 = vshrl.u32 %v3633_v43, 16 }
  0x4a   : > { %2684 = vmatmul.mubr.msk.bf16.gmra.mrb[24].mxu1 %vm349_vm4, %v332_v54  ;;  %v1534_v54 = vrot.slane %v3663_v53, 2 }
  0x4b   : > { %2687 = vmatprep.mubr.msk.bf16.mxu1 %vm3325_vm1, %v3324_v2 }
  0x4c   : > { %2854 = vmatmul.mubr.msk.bf16.gmra.mrb[4].mxu0 %vm349_vm4, %v1292_v58  ;;  %v1535_v55 = vsel %vm1287_vm5, %v1532_v50, %v1534_v54  ;;  %v612_v58 = vld [vmem:[%s3383_s25] sm:$0xe]  ;;  %v1537_v63 = vsel %vm1287_vm5, %v1534_v54, %v1536_v60  ;;  %v1714_v50 = vrot.slane %v1712_v44, 3  ;;  %v1722_v54 = vrot.slane %v1720_v46, 3 }
  0x4d   : > { %2857 = vmatprep.mubr.msk.bf16.mxu0 %vm3325_vm1, %v3324_v2  ;;  %v2380_v61 = vcombine.low %v612_v58, %v3387_v6  ;;  %v2390_v6 = vld [vmem:[%s4030_s1 + $0x6] sm:$0x3] }
  0x4e   : > { %v907_v12 = vsel %vm377_vm0, %v2390_v6, 0 }
  0x4f   : > { %v619_v1 = vrot.slane %v2380_v61, 1  ;;  %v1729_v61 = vshll.u32 %v3649_v48, 16 }
  0x51   : > { %v621_v9 = vsel %vm618_vm6, %v619_v1, %v620_v4  ;;  %v2463_v1 = vld [vmem:[%s4030_s1 + $0x10] sm:$0x3]  ;;  %v1731_v6 = vrot.slane %v1729_v61, 3 }
  0x52   : > { %2688 = vmatmul.mubr.msk.bf16.gmra.mrb[28].mxu1 %vm349_vm4, %v340_v0  ;;  %v3689_v0 = vld [vmem:[%s3383_s25 + $0x38] sm:$0xff]  }
  0x53   : > { %2691 = vmatprep.mubr.msk.bf16.mxu1 %vm3325_vm1, %v3324_v2 }
  0x54   : > { %2858 = vmatmul.mubr.msk.bf16.gmra.mrb[8].mxu0 %vm349_vm4, %v1294_v5  ;;  %v1538_v5 = vrot.slane %v3689_v0, 2 }
  0x55   : > { %2861 = vmatprep.mubr.msk.bf16.mxu0 %vm3325_vm1, %v3324_v2 }
  0x5a   : > { %2692 = vmatmul.mubr.msk.bf16.gmra.mrb[32].mxu1 %vm349_vm4, %v348_v18  ;;  %v622_v18 = vrot.slane %v3412_v17, 1 }
  0x5b   : > { %2697 = vmatprep.mubr.msk.bf16.mxu1 %vm3325_vm1, %v3324_v2 }
  0x5c   : > { %2862 = vmatmul.mubr.msk.bf16.gmra.mrb[12].mxu0 %vm349_vm4, %v1296_v19  ;;  %v1540_v19 = vrot.slane %v3706_v13, 2  ;;  %v623_v20 = vsel %vm618_vm6, %v620_v4, %v622_v18 }
  0x5d   : > { %2865 = vmatprep.mubr.msk.bf16.mxu0 %vm3325_vm1, %v3324_v2 }
  0x62   : > { %2698 = vmatmul.mubr.msk.bf16.vlgmr.msra.gmra.mrb[0].mxu1 %vm349_vm4, %v3390_v7  ;;  %v1300_v7 = vsel %vm1287_vm5, %v1297_v21, %v1299_v25  ;;  %v1541_v21 = vsel %vm1287_vm5, %v1538_v5, %v1540_v19 }
  0x63   : > { %2701 = vmatprep.mubr.msk.bf16.mxu1 %vm3325_vm1, %v3324_v2  ;;  %2734 = vmatpush3.bf16.msra.mxu1 %v666_v22  ;;  %v3720_v22 = vld [vmem:[%s3383_s25 + $0x48] sm:$0xff]  }
  0x64   : > { %2771 = vmatprep.subr.bf16.mxu1 %v3324_v2  ;;  %2866 = vmatmul.mubr.msk.bf16.gmra.mrb[16].mxu0 %vm349_vm4, %v1298_v23  ;;  %v1542_v23 = vrot.slane %v3720_v22, 2 }
  0x65   : > { %2869 = vmatprep.mubr.msk.bf16.mxu0 %vm3325_vm1, %v3324_v2 }
  0x6a   : > { %2702 = vmatmul.mubr.msk.bf16.gmra.mrb[4].mxu1 %vm349_vm4, %v3393_v8  ;;  %v1539_v8 = vsel %vm1287_vm5, %v1536_v60, %v1538_v5  ;;  %v1726_v60 = vshrl.u32 %v3649_v48, 16  ;;  %v2004_v5 = vsel %vm377_vm0, %v2463_v1, 0 }
  0x6b   : > { %2705 = vmatprep.mubr.msk.bf16.mxu1 %vm3325_vm1, %v3324_v2 }
  0x6c   : > { %2870 = vmatmul.mubr.msk.bf16.gmra.mrb[20].mxu0 %vm349_vm4, %v1300_v7  ;;  %v1543_v7 = vsel %vm1287_vm5, %v1540_v19, %v1542_v23  ;;  %v1728_v4 = vrot.slane %v1726_v60, 2  ;;  %v1774_v60 = vshll.u32 %v3720_v22, 16 }
  0x6d   : > { %2873 = vmatprep.mubr.msk.bf16.mxu0 %vm3325_vm1, %v3324_v2 }
  0x6e   : > { %v1776_v1 = vrot.slane %v1774_v60, 3 }
  0x72   : > { %2706 = vmatmul.mubr.msk.bf16.gmra.mrb[8].mxu1 %vm349_vm4, %v3412_v17  ;;  %v624_v17 = vrot.slane %v3438_v45, 1 }
  0x73   : > { %2709 = vmatprep.mubr.msk.bf16.mxu1 %vm3325_vm1, %v3324_v2 }
  0x74   : > { %2874 = vmatmul.mubr.msk.bf16.gmra.mrb[24].mxu0 %vm349_vm4, %v1302_v29  ;;  %v625_v25 = vsel %vm618_vm6, %v622_v18, %v624_v17  ;;  %v1544_v29 = vrot.slane %v3733_v28, 2  ;;  %v1738_v18 = vshll.u32 %v3663_v53, 16 }
  0x75   : > { %2877 = vmatprep.mubr.msk.bf16.mxu0 %vm3325_vm1, %v3324_v2 }
  0x76   : > { %v1545_v36 = vsel %vm1287_vm5, %v1542_v23, %v1544_v29 }
  0x7a   : > { %2710 = vmatmul.mubr.msk.bf16.gmra.mrb[12].mxu1 %vm349_vm4, %v3438_v45  ;;  %v626_v45 = vrot.slane %v3459_v59, 1 }
  0x7b   : > { %2713 = vmatprep.mubr.msk.bf16.mxu1 %vm3325_vm1, %v3324_v2 }
  0x7c   : > { %2878 = vmatmul.mubr.msk.bf16.gmra.mrb[28].mxu0 %vm349_vm4, %v1304_v34  ;;  %v627_v33 = vsel %vm618_vm6, %v624_v17, %v626_v45  ;;  %v3312_v34 = vld [vmem:[%s3383_s25 + $0x58] ss:$0 sps:$4 sm:$0x33]   ;;  %v1740_v17 = vrot.slane %v1738_v18, 3 }
  0x7d   : > { %2881 = vmatprep.mubr.msk.bf16.mxu0 %vm3325_vm1, %v3324_v2  ;;  %v3843_v18 = vld [vmem:[%s3383_s25 + $0x58] ss:$0 sps:$4 sm:$0x77]  }
  0x82   : > { %2714 = vmatmul.mubr.msk.bf16.gmra.mrb[16].mxu1 %vm349_vm4, %v3459_v59  ;;  %v1546_v59 = vrot.slane %v3312_v34, 2 }
  0x83   : > { %2717 = vmatprep.mubr.msk.bf16.mxu1 %vm3325_vm1, %v3324_v2 }
  0x84   : > { %2882 = vmatmul.mubr.msk.bf16.gmra.mrb[32].mxu0 %vm349_vm4, %v1306_v39  ;;  %v1709_v39 = vshrl.u32 %v3630_v42, 16 }
  0x85   : > { %2887 = vmatprep.mubr.msk.bf16.mxu0 %vm3325_vm1, %v3324_v2 }
  0x8a   : > { %2718 = vmatmul.mubr.msk.bf16.gmra.mrb[20].mxu1 %vm349_vm4, %v3477_v16  ;;  %v1711_v16 = vrot.slane %v1709_v39, 2 }
  0x8b   : > { %2721 = vmatprep.mubr.msk.bf16.mxu1 %vm3325_vm1, %v3324_v2 }
  0x8c   : > { %2888 = vmatmul.mubr.msk.bf16.vlgmr.msra.gmra.mrb[0].mxu0 %vm349_vm4, %v1531_v47  ;;  %v629_v47 = vsel %vm618_vm6, %v626_v45, %v628_v37  ;;  %v1715_v42 = vor.u32 %v1714_v50, %v1711_v16  ;;  %v1762_v16 = vshrl.u32 %v3706_v13, 16  ;;  %v1765_v50 = vshll.u32 %v3706_v13, 16 }
  0x8d   : > { %2924 = vmatpush3.bf16.msra.mxu0 %v1825_v49  ;;  %2891 = vmatprep.mubr.msk.bf16.mxu0 %vm3325_vm1, %v3324_v2  ;;  %v1547_v49 = vsel %vm1287_vm5, %v1544_v29, %v1546_v59  ;;  %v1756_v59 = vshll.u32 %v3689_v0, 16 }
  0x8e   : > { %2961 = vmatprep.subr.bf16.mxu0 %v3324_v2 }
  0x8f   : > { %v1758_v46 = vrot.slane %v1756_v59, 3  ;;  %v873_v59 = vrot.slane %v3590_v27, 1 }
  0x92   : > { %2722 = vmatmul.mubr.msk.bf16.gmra.mrb[24].mxu1 %vm349_vm4, %v3492_v30 }
  0x93   : > { %2725 = vmatprep.mubr.msk.bf16.mxu1 %vm3325_vm1, %v3324_v2 }
  0x94   : > { %2892 = vmatmul.mubr.msk.bf16.gmra.mrb[4].mxu0 %vm349_vm4, %v1533_v51  ;;  %v1719_v51 = vrot.slane %v1717_v10, 2 }
  0x95   : > { %2895 = vmatprep.mubr.msk.bf16.mxu0 %vm3325_vm1, %v3324_v2 }
  0x96   : > { %v1723_v58 = vor.u32 %v1722_v54, %v1719_v51 }
  0x9a   : > { %2726 = vmatmul.mubr.msk.bf16.gmra.mrb[28].mxu1 %vm349_vm4, %v3510_v41 }
  0x9b   : > { %2729 = vmatprep.mubr.msk.bf16.mxu1 %vm3325_vm1, %v3324_v2 }
  0x9c   : > { %2896 = vmatmul.mubr.msk.bf16.gmra.mrb[8].mxu0 %vm349_vm4, %v1535_v55  ;;  %v630_v55 = vrot.slane %v3492_v30, 1  ;;  %v1724_v30 = vsel %vm1707_vm7, %v1715_v42, %v1723_v58 }
  0x9d   : > { %2899 = vmatprep.mubr.msk.bf16.mxu0 %vm3325_vm1, %v3324_v2 }
  0xa2   : > { %2730 = vmatmul.mubr.msk.bf16.gmra.mrb[32].mxu1 %vm349_vm4, %v3528_v52 }
  0xa3   : > { %2735 = vmatprep.mubr.msk.bf16.mxu1 %vm3325_vm1, %v3324_v2 }
  0xa4   : > { %2900 = vmatmul.mubr.msk.bf16.gmra.mrb[12].mxu0 %vm349_vm4, %v1537_v63  ;;  %v631_v63 = vsel %vm618_vm6, %v628_v37, %v630_v55  ;;  %v1753_v37 = vshrl.u32 %v3689_v0, 16 }
  0xa5   : > { %2903 = vmatprep.mubr.msk.bf16.mxu0 %vm3325_vm1, %v3324_v2 }
  0xa6   : > { %v1755_v10 = vrot.slane %v1753_v37, 2 }
  0xaa   : > { %2736 = vmatmul.mubr.msk.bf16.vlgmr.msra.gmra.mrb[0].mxu1 %vm349_vm4, %v621_v9  ;;  %v632_v9 = vrot.slane %v3510_v41, 1  ;;  %v634_v41 = vrot.slane %v3528_v52, 1  ;;  %v636_v52 = vrot.slane %v3543_v62, 1  ;;  %v860_v62 = vrot.slane %v3403_v14, 1 }
  0xab   : > { %2739 = vmatprep.mubr.msk.bf16.mxu1 %vm3325_vm1, %v3324_v2  ;;  %2772 = vmatpush3.bf16.msra.mxu1 %v907_v12  ;;  %v1732_v12 = vor.u32 %v1731_v6, %v1728_v4  ;;  %v1767_v14 = vrot.slane %v1765_v50, 3  ;;  %v1780_v4 = vshrl.u32 %v3733_v28, 16  ;;  %v1783_v6 = vshll.u32 %v3733_v28, 16 }
  0xac   : > { %2999 = vmatprep.subr.bf16.mxu1 %v3324_v2  ;;  %2904 = vmatmul.mubr.msk.bf16.gmra.mrb[16].mxu0 %vm349_vm4, %v1539_v8  ;;  %v1735_v8 = vshrl.u32 %v3663_v53, 16  ;;  %v633_v19 = vsel %vm618_vm6, %v630_v55, %v632_v9  ;;  %v635_v45 = vsel %vm618_vm6, %v632_v9, %v634_v41  ;;  %v637_v39 = vsel %vm618_vm6, %v634_v41, %v636_v52 }
  0xad   : > { %2907 = vmatprep.mubr.msk.bf16.mxu0 %vm3325_vm1, %v3324_v2  ;;  %v1764_v55 = vrot.slane %v1762_v16, 2  ;;  %v1093_v16 = vshrl.u32 %v3577_v24, 16  ;;  %v1096_v50 = vshll.u32 %v3577_v24, 16 }
  0xaf   : > { %v1768_v42 = vor.u32 %v1767_v14, %v1764_v55  ;;  %v1098_v55 = vrot.slane %v1096_v50, 2 }
  0xb2   : > { %2740 = vmatmul.mubr.msk.bf16.gmra.mrb[4].mxu1 %vm349_vm4, %v623_v20  ;;  %v1733_v20 = vsel %vm1707_vm7, %v1723_v58, %v1732_v12  ;;  %v1771_v58 = vshrl.u32 %v3720_v22, 16 }
  0xb3   : > { %2743 = vmatprep.mubr.msk.bf16.mxu1 %vm3325_vm1, %v3324_v2 }
  0xb4   : > { %2908 = vmatmul.mubr.msk.bf16.gmra.mrb[20].mxu0 %vm349_vm4, %v1541_v21  ;;  %v1737_v21 = vrot.slane %v1735_v8, 2  ;;  %v1785_v8 = vrot.slane %v1783_v6, 3 }
  0xb5   : > { %2911 = vmatprep.mubr.msk.bf16.mxu0 %vm3325_vm1, %v3324_v2 }
  0xb6   : > { %v1741_v23 = vor.u32 %v1740_v17, %v1737_v21  ;;  %v1792_v21 = vshll.u32 %v3843_v18, 16 }
  0xb8   : > { %v1742_v29 = vsel %vm1707_vm7, %v1732_v12, %v1741_v23  ;;  %v1782_v12 = vrot.slane %v1780_v4, 2 }
  0xba   : > { %2744 = vmatmul.mubr.msk.bf16.gmra.mrb[8].mxu1 %vm349_vm4, %v625_v25  ;;  %v1744_v25 = vshrl.u32 %v3675_v57, 16 }
  0xbb   : > { %2747 = vmatprep.mubr.msk.bf16.mxu1 %vm3325_vm1, %v3324_v2 }
  0xbc   : > { %2912 = vmatmul.mubr.msk.bf16.gmra.mrb[24].mxu0 %vm349_vm4, %v1543_v7  ;;  %v1747_v7 = vshll.u32 %v3675_v57, 16 }
  0xbd   : > { %2915 = vmatprep.mubr.msk.bf16.mxu0 %vm3325_vm1, %v3324_v2 }
  0xbe   : > { %v1749_v34 = vrot.slane %v1747_v7, 3 }
  0xc2   : > { %2748 = vmatmul.mubr.msk.bf16.gmra.mrb[12].mxu1 %vm349_vm4, %v627_v33  ;;  %v1746_v33 = vrot.slane %v1744_v25, 2  ;;  %v1794_v25 = vrot.slane %v1792_v21, 3  ;;  %v1974_v21 = vrot.slane %v3843_v18, 3 }
  0xc3   : > { %2751 = vmatprep.mubr.msk.bf16.mxu1 %vm3325_vm1, %v3324_v2 }
  0xc4   : > { %2916 = vmatmul.mubr.msk.bf16.gmra.mrb[28].mxu0 %vm349_vm4, %v1545_v36  ;;  %v1750_v36 = vor.u32 %v1749_v34, %v1746_v33 }
  0xc5   : > { %2919 = vmatprep.mubr.msk.bf16.mxu0 %vm3325_vm1, %v3324_v2 }
  0xc6   : > { %v1751_v44 = vsel %vm1707_vm7, %v1741_v23, %v1750_v36 }
  0xca   : > { %2752 = vmatmul.mubr.msk.bf16.gmra.mrb[16].mxu1 %vm349_vm4, %v629_v47  ;;  %v861_v47 = vrot.slane %v3406_v15, 1  ;;  %v863_v15 = vrot.slane %v3423_v26, 1  ;;  %v1773_v26 = vrot.slane %v1771_v58, 2 }
  0xcb   : > { %2755 = vmatprep.mubr.msk.bf16.mxu1 %vm3325_vm1, %v3324_v2 }
  0xcc   : > { %2920 = vmatmul.mubr.msk.bf16.gmra.mrb[32].mxu0 %vm349_vm4, %v1547_v49  ;;  %v1759_v49 = vor.u32 %v1758_v46, %v1755_v10  ;;  %v862_v51 = vsel %vm618_vm6, %v860_v62, %v861_v47  ;;  %v864_v61 = vsel %vm618_vm6, %v861_v47, %v863_v15  ;;  %v875_v10 = vrot.slane %v3602_v32, 1  ;;  %v3315_v62 = vld [vmem:[%s3383_s25 + $0x50] ss:$0 sps:$4 sm:$0x11]  }
  0xcd   : > { %2925 = vmatprep.mubr.msk.bf16.mxu0 %vm3325_vm1, %v3324_v2  ;;  %v1962_v46 = vrot.slane %v3663_v53, 3  ;;  %v1964_v53 = vrot.slane %v3675_v57, 3  ;;  %v1966_v57 = vrot.slane %v3689_v0, 3 }
  0xce   : > { %v1760_v54 = vsel %vm1707_vm7, %v1750_v36, %v1759_v49  ;;  %v1958_v36 = vrot.slane %v3633_v43, 3  ;;  %v1960_v43 = vrot.slane %v3649_v48, 3  ;;  %v876_v48 = vsel %vm618_vm6, %v873_v59, %v875_v10 }
  0xcf   : > { %v1965_v14 = vsel %vm1956_vm8, %v1962_v46, %v1964_v53 }
  0xd0   : > { %v1963_v47 = vsel %vm1956_vm8, %v1960_v43, %v1962_v46 }
  0xd2   : > { %2756 = vmatmul.mubr.msk.bf16.gmra.mrb[20].mxu1 %vm349_vm4, %v631_v63  ;;  %v1769_v63 = vsel %vm1707_vm7, %v1759_v49, %v1768_v42  ;;  %v877_v49 = vrot.slane %v3315_v62, 1  ;;  %v3972_v62 = vld [vmem:[%s4032_s3] ss:$0 sm:$0xff] }
  0xd3   : > { %2759 = vmatprep.mubr.msk.bf16.mxu1 %vm3325_vm1, %v3324_v2 }
  0xd4   : > { %2926 = vmatmul.mubr.msk.bf16.vlgmr.msra.gmra.mrb[0].mxu0 %vm349_vm4, %v1724_v30  ;;  %v1777_v30 = vor.u32 %v1776_v1, %v1773_v26  ;;  %v1111_v26 = vshrl.u32 %v3602_v32, 16  ;;  %v1114_v1 = vshll.u32 %v3602_v32, 16  ;;  %v1120_v32 = vshrl.u32 %v3614_v35, 16 }
  0xd5   : > { %2962 = vmatpush3.bf16.msra.mxu0 %v2004_v5  ;;  %2929 = vmatprep.mubr.msk.bf16.mxu0 %vm3325_vm1, %v3324_v2 }
  0xd6   : > { %v1778_v9 = vsel %vm1707_vm7, %v1768_v42, %v1777_v30  ;;  %v1105_v42 = vshll.u32 %v3590_v27, 16 }
  0xda   : > { %2760 = vmatmul.mubr.msk.bf16.gmra.mrb[24].mxu1 %vm349_vm4, %v633_v19  ;;  %v1786_v19 = vor.u32 %v1785_v8, %v1782_v12  ;;  %v1122_v12 = vrot.slane %v1120_v32, 1 }
  0xdb   : > { %2763 = vmatprep.mubr.msk.bf16.mxu1 %vm3325_vm1, %v3324_v2 }
  0xdc   : > { %2930 = vmatmul.mubr.msk.bf16.gmra.mrb[4].mxu0 %vm349_vm4, %v1733_v20  ;;  %v1789_v20 = vshrl.u32 %v3843_v18, 16  ;;  %v1787_v41 = vsel %vm1707_vm7, %v1777_v30, %v1786_v19  ;;  %v1116_v30 = vrot.slane %v1114_v1, 2 }
  0xdd   : > { %2933 = vmatprep.mubr.msk.bf16.mxu0 %vm3325_vm1, %v3324_v2 }
  0xde   : > { %v1791_v23 = vrot.slane %v1789_v20, 2 }
  0xe0   : > { %v1795_v7 = vor.u32 %v1794_v25, %v1791_v23 }
  0xe2   : > { %2764 = vmatmul.mubr.msk.bf16.gmra.mrb[28].mxu1 %vm349_vm4, %v635_v45  ;;  %v1796_v33 = vsel %vm1707_vm7, %v1786_v19, %v1795_v7 }
  0xe3   : > { %2767 = vmatprep.mubr.msk.bf16.mxu1 %vm3325_vm1, %v3324_v2 }
  0xe4   : > { %2934 = vmatmul.mubr.msk.bf16.gmra.mrb[8].mxu0 %vm349_vm4, %v1742_v29  ;;  %v1950_v29 = vld [vmem:[%s3383_s25 + $0x10] sm:$0x8] }
  0xe5   : > { %2937 = vmatprep.mubr.msk.bf16.mxu0 %vm3325_vm1, %v3324_v2  ;;  %v2464_v34 = vcombine.low %v1950_v29, %v3624_v38 }
  0xe7   : > { %v1957_v52 = vrot.slane %v2464_v34, 3 }
  0xe9   : > { %v1959_v38 = vsel %vm1956_vm8, %v1957_v52, %v1958_v36 }
  0xea   : > { %2768 = vmatmul.mubr.msk.bf16.gmra.mrb[32].mxu1 %vm349_vm4, %v637_v39 }
  0xeb   : > { %2773 = vmatprep.mubr.msk.bf16.mxu1 %vm3325_vm1, %v3324_v2 }
  0xec   : > { %2938 = vmatmul.mubr.msk.bf16.gmra.mrb[12].mxu0 %vm349_vm4, %v1751_v44  ;;  %v1961_v44 = vsel %vm1956_vm8, %v1958_v36, %v1960_v43 }
  0xed   : > { %2941 = vmatprep.mubr.msk.bf16.mxu0 %vm3325_vm1, %v3324_v2 }
  0xf2   : > { %2774 = vmatmul.mubr.msk.bf16.vlgmr.msra.gmra.mrb[0].mxu1 %vm349_vm4, %v862_v51  ;;  %v878_v51 = vsel %vm618_vm6, %v875_v10, %v877_v49  ;;  %v3967_v10 = vld [vmem:[%s4031_s2] ss:$0 sm:$0xff] }
  0xf3   : > { %2777 = vmatprep.mubr.msk.bf16.mxu1 %vm3325_vm1, %v3324_v2  ;;  %3000 = vmatpush3.bf16.msra.mxu1 %v3368_v3  ;;  %v865_v3 = vrot.slane %v3432_v40, 1  ;;  %v867_v40 = vrot.slane %v3454_v56, 1  ;;  %v869_v56 = vrot.slane %v3472_v11, 1  ;;  %v871_v11 = vrot.slane %v3577_v24, 1 }
  0xf4   : > { %2942 = vmatmul.mubr.msk.bf16.gmra.mrb[16].mxu0 %vm349_vm4, %v1760_v54  ;;  %v1095_v54 = vrot.slane %v1093_v16, 1  ;;  %v1102_v24 = vshrl.u32 %v3590_v27, 16 }
  0xf5   : > { %2945 = vmatprep.mubr.msk.bf16.mxu0 %vm3325_vm1, %v3324_v2  ;;  %v866_v5 = vsel %vm618_vm6, %v863_v15, %v865_v3  ;;  %v868_v17 = vsel %vm618_vm6, %v865_v3, %v867_v40  ;;  %v870_v45 = vsel %vm618_vm6, %v867_v40, %v869_v56  ;;  %v872_v37 = vsel %vm618_vm6, %v869_v56, %v871_v11 }
  0xf6   : > { %v874_v39 = vsel %vm618_vm6, %v871_v11, %v873_v59  ;;  %v1099_v15 = vor.u32 %v1098_v55, %v1095_v54  ;;  %v1104_v60 = vrot.slane %v1102_v24, 1  ;;  %v1113_v3 = vrot.slane %v1111_v26, 1 }
  0xf8   : > { %v1100_v58 = vsel %vm1038_vm3, %v3497_v31, %v1099_v15  ;;  %v1968_v31 = vrot.slane %v3706_v13, 3  ;;  %v1117_v6 = vor.u32 %v1116_v30, %v1113_v3  ;;  %v1970_v13 = vrot.slane %v3720_v22, 3 }
  0xfa   : > { %2778 = vmatmul.mubr.msk.bf16.gmra.mrb[4].mxu1 %vm349_vm4, %v864_v61  ;;  %v1107_v61 = vrot.slane %v1105_v42, 2  ;;  %v1969_v4 = vsel %vm1956_vm8, %v1966_v57, %v1968_v31  ;;  %v1971_v40 = vsel %vm1956_vm8, %v1968_v31, %v1970_v13 }
  0xfb   : > { %2781 = vmatprep.mubr.msk.bf16.mxu1 %vm3325_vm1, %v3324_v2 }
  0xfc   : > { %2946 = vmatmul.mubr.msk.bf16.gmra.mrb[20].mxu0 %vm349_vm4, %v1769_v63  ;;  %v1967_v63 = vsel %vm1956_vm8, %v1964_v53, %v1966_v57  ;;  %v1108_v27 = vor.u32 %v1107_v61, %v1104_v60 }
  0xfd   : > { %2949 = vmatprep.mubr.msk.bf16.mxu0 %vm3325_vm1, %v3324_v2 }
  0xfe   : > { %v1109_v0 = vsel %vm1038_vm3, %v1099_v15, %v1108_v27 }
 0x102   : > { %2782 = vmatmul.mubr.msk.bf16.gmra.mrb[8].mxu1 %vm349_vm4, %v866_v5  ;;  %v1123_v5 = vshll.u32 %v3614_v35, 16  ;;  %v1972_v35 = vrot.slane %v3733_v28, 3 }
 0x103   : > { %2785 = vmatprep.mubr.msk.bf16.mxu1 %vm3325_vm1, %v3324_v2 }
 0x104   : > { %2950 = vmatmul.mubr.msk.bf16.gmra.mrb[24].mxu0 %vm349_vm4, %v1778_v9  ;;  %v1118_v9 = vsel %vm1038_vm3, %v1108_v27, %v1117_v6  ;;  %v1125_v8 = vrot.slane %v1123_v5, 2  ;;  %v1973_v20 = vsel %vm1956_vm8, %v1970_v13, %v1972_v35 }
 0x105   : > { %2953 = vmatprep.mubr.msk.bf16.mxu0 %vm3325_vm1, %v3324_v2 }
 0x106   : > { %v1126_v19 = vor.u32 %v1125_v8, %v1122_v12 }
 0x108   : > { %v1127_v22 = vsel %vm1038_vm3, %v1117_v6, %v1126_v19 }
 0x10a   : > { %2786 = vmatmul.mubr.msk.bf16.gmra.mrb[12].mxu1 %vm349_vm4, %v868_v17  ;;  %v1975_v17 = vsel %vm1956_vm8, %v1972_v35, %v1974_v21 }
 0x10b   : > { %2789 = vmatprep.mubr.msk.bf16.mxu1 %vm3325_vm1, %v3324_v2 }
 0x10c   : > { %2954 = vmatmul.mubr.msk.bf16.gmra.mrb[28].mxu0 %vm349_vm4, %v1787_v41 }
 0x10d   : > { %2957 = vmatprep.mubr.msk.bf16.mxu0 %vm3325_vm1, %v3324_v2 }
 0x112   : > { %2790 = vmatmul.mubr.msk.bf16.gmra.mrb[16].mxu1 %vm349_vm4, %v870_v45 }
 0x113   : > { %2793 = vmatprep.mubr.msk.bf16.mxu1 %vm3325_vm1, %v3324_v2 }
 0x114   : > { %2958 = vmatmul.mubr.msk.bf16.gmra.mrb[32].mxu0 %vm349_vm4, %v1796_v33 }
 0x115   : > { %2963 = vmatprep.mubr.msk.bf16.mxu0 %vm3325_vm1, %v3324_v2 }
 0x11a   : > { %2794 = vmatmul.mubr.msk.bf16.gmra.mrb[20].mxu1 %vm349_vm4, %v872_v37 }
 0x11b   : > { %2797 = vmatprep.mubr.msk.bf16.mxu1 %vm3325_vm1, %v3324_v2 }
 0x11c   : > { %2964 = vmatmul.mubr.msk.bf16.vlgmr.msra.gmra.mrb[0].mxu0 %vm349_vm4, %v1959_v38 }
 0x11d   : > { %2967 = vmatprep.mubr.msk.bf16.mxu0 %vm3325_vm1, %v3324_v2 }
 0x122   : > { %2798 = vmatmul.mubr.msk.bf16.gmra.mrb[24].mxu1 %vm349_vm4, %v874_v39 }
 0x123   : > { %2801 = vmatprep.mubr.msk.bf16.mxu1 %vm3325_vm1, %v3324_v2 }
 0x124   : > { %2968 = vmatmul.mubr.msk.bf16.gmra.mrb[4].mxu0 %vm349_vm4, %v1961_v44 }
 0x125   : > { %2971 = vmatprep.mubr.msk.bf16.mxu0 %vm3325_vm1, %v3324_v2 }
 0x12a   : > { %2802 = vmatmul.mubr.msk.bf16.gmra.mrb[28].mxu1 %vm349_vm4, %v876_v48 }
 0x12b   : > { %2805 = vmatprep.mubr.msk.bf16.mxu1 %vm3325_vm1, %v3324_v2 }
 0x12c   : > { %2972 = vmatmul.mubr.msk.bf16.gmra.mrb[8].mxu0 %vm349_vm4, %v1963_v47 }
 0x12d   : > { %2975 = vmatprep.mubr.msk.bf16.mxu0 %vm3325_vm1, %v3324_v2 }
 0x132   : > { %2806 = vmatmul.mubr.msk.bf16.gmra.mrb[32].mxu1 %vm349_vm4, %v878_v51 }
 0x133   : > { %2831 = vmatprep.mubr.msk.bf16.mxu1 %vm3325_vm1, %v3324_v2 }
 0x134   : > { %2976 = vmatmul.mubr.msk.bf16.gmra.mrb[12].mxu0 %vm349_vm4, %v1965_v14 }
 0x135   : > { %2979 = vmatprep.mubr.msk.bf16.mxu0 %vm3325_vm1, %v3324_v2 }
 0x13a   : > { %2832 = vmatmul.mubr.msk.bf16.vlgmr.msra.gmra.mrb[20].mxu1 %vm349_vm4, %v1100_v58 }
 0x13b   : > { %2835 = vmatprep.mubr.msk.bf16.mxu1 %vm3325_vm1, %v3324_v2 }
 0x13c   : > { %2980 = vmatmul.mubr.msk.bf16.gmra.mrb[16].mxu0 %vm349_vm4, %v1967_v63 }
 0x13d   : > { %2983 = vmatprep.mubr.msk.bf16.mxu0 %vm3325_vm1, %v3324_v2 }
 0x142   : > { %2836 = vmatmul.mubr.msk.bf16.gmra.mrb[24].mxu1 %vm349_vm4, %v1109_v0 }
 0x143   : > { %2839 = vmatprep.mubr.msk.bf16.mxu1 %vm3325_vm1, %v3324_v2 }
 0x144   : > { %2984 = vmatmul.mubr.msk.bf16.gmra.mrb[20].mxu0 %vm349_vm4, %v1969_v4 }
 0x145   : > { %2987 = vmatprep.mubr.msk.bf16.mxu0 %vm3325_vm1, %v3324_v2 }
 0x14a   : > { %2840 = vmatmul.mubr.msk.bf16.gmra.mrb[28].mxu1 %vm349_vm4, %v1118_v9 }
 0x14b   : > { %2843 = vmatprep.mubr.msk.bf16.mxu1 %vm3325_vm1, %v3324_v2 }
 0x14c   : > { %2988 = vmatmul.mubr.msk.bf16.gmra.mrb[24].mxu0 %vm349_vm4, %v1971_v40 }
 0x14d   : > { %2991 = vmatprep.mubr.msk.bf16.mxu0 %vm3325_vm1, %v3324_v2 }
 0x152   : > { %2844 = vmatmul.mubr.msk.bf16.gmra.mrb[32].mxu1 %vm349_vm4, %v1127_v22 }
 0x154   : > { %2992 = vmatmul.mubr.msk.bf16.gmra.mrb[28].mxu0 %vm349_vm4, %v1973_v20 }
 0x155   : > { %2995 = vmatprep.mubr.msk.bf16.mxu0 %vm3325_vm1, %v3324_v2 }
 0x15c   : > { %2996 = vmatmul.mubr.msk.bf16.gmra.mrb[32].mxu0 %vm349_vm4, %v1975_v17 }
 0x1c5   : > { %v943_v41 = vpop.f32.mrb[0].mxu1 }
 0x1c6   : > { %v2775_v23 = vpop.f32.mrb[1].mxu1 }
 0x1c7   : > { %v946_v28 = vpop.f32.mrb[2].mxu1 }
 0x1c8   : > { %v2776_v25 = vpop.f32.mrb[3].mxu1 }
 0x1cd   : > { %v951_v56 = vpop.f32.mrb[4].mxu1 }
 0x1ce   : > { %v2779_v7 = vpop.f32.mrb[5].mxu1 }
 0x1cf   : > { %v954_v45 = vpop.f32.mrb[6].mxu1 }
 0x1d0   : > { %v2780_v29 = vpop.f32.mrb[7].mxu1 }
 0x1d5   : > { %v959_v33 = vpop.f32.mrb[8].mxu1 }
 0x1d6   : > { %v2783_v34 = vpop.f32.mrb[9].mxu1 }
 0x1d7   : > { %v962_v11 = vpop.f32.mrb[10].mxu1 }
 0x1d8   : > { %v2784_v52 = vpop.f32.mrb[11].mxu1 }
 0x1dd   : > { %v967_v2 = vpop.f32.mrb[12].mxu1 }
 0x1de   : > { %v2787_v36 = vpop.f32.mrb[13].mxu1 }
 0x1df   : > { %v970_v18 = vpop.f32.mrb[14].mxu1 }
 0x1e0   : > { %v2788_v37 = vpop.f32.mrb[15].mxu1 }
 0x1e5   : > { %v3958_v38 = vpop.f32.mrb[16].mxu1 }
 0x1e6   : > { %v2791_v59 = vpop.f32.mrb[17].mxu1 }
 0x1e7   : > { %v3960_v43 = vpop.f32.mrb[18].mxu1 }
 0x1e8   : > { %v2792_v39 = vpop.f32.mrb[19].mxu1 }
 0x1ef   : > { %v2040_v44 = vpop.f32.mrb[0].mxu0 }
 0x1f0   : > { %v3001_v46 = vadd.f32 %v2040_v44, %v943_v41  ;;  %v2965_v48 = vpop.f32.mrb[1].mxu0 }
 0x1f1   : > { %v2043_v47 = vpop.f32.mrb[2].mxu0 }
 0x1f2   : > { %v2136_v49 = vmul.f32 %v3001_v46, %v3967_v10  ;;  %v3002_v16 = vadd.f32 %v2043_v47, %v946_v28  ;;  %v2966_v50 = vpop.f32.mrb[3].mxu0 }
 0x1f4   : > { %v2161_v53 = vadd.f32 %v3972_v62, %v2136_v49  ;;  %v2137_v51 = vmul.f32 %v3002_v16, %v3967_v10 }
 0x1f6   : > { %v2162_v54 = vadd.f32 %v3972_v62, %v2137_v51  ;;  %v2179_v14 = vmax.f32 %v2161_v53, 0.0 }
 0x1f7   : > { %v2048_v55 = vpop.f32.mrb[4].mxu0 }
 0x1f8   : > { %v2180_v15 = vmax.f32 %v2162_v54, 0.0  ;;  %v3003_v24 = vadd.f32 %v2048_v55, %v951_v56  ;;  %v2969_v42 = vpop.f32.mrb[5].mxu0 }
 0x1f9   : > { %v2051_v57 = vpop.f32.mrb[6].mxu0 }
 0x1fa   : > { %v2517_v58 = vpack.c.bf16 %v2180_v15, %v2179_v14  ;;  %v2138_v60 = vmul.f32 %v3003_v24, %v3967_v10  ;;  %v3004_v61 = vadd.f32 %v2051_v57, %v954_v45  ;;  %v2970_v63 = vpop.f32.mrb[7].mxu0 }
 0x1fc   : > { %2518 = vst [vmem:[%s3981_s23] sm:$0xff] %v2517_v58   ;;  %v2163_v27 = vadd.f32 %v3972_v62, %v2138_v60  ;;  %v2139_v26 = vmul.f32 %v3004_v61, %v3967_v10 }
 0x1fe   : > { %v2164_v1 = vadd.f32 %v3972_v62, %v2139_v26  ;;  %v2181_v0 = vmax.f32 %v2163_v27, 0.0 }
 0x1ff   : > { %v2056_v31 = vpop.f32.mrb[8].mxu0 }
 0x200   : > { %v2182_v3 = vmax.f32 %v2164_v1, 0.0  ;;  %v3005_v30 = vadd.f32 %v2056_v31, %v959_v33  ;;  %v2973_v4 = vpop.f32.mrb[9].mxu0 }
 0x201   : > { %v2059_v6 = vpop.f32.mrb[10].mxu0 }
 0x202   : > { %v2522_v32 = vpack.c.bf16 %v2182_v3, %v2181_v0  ;;  %v2140_v5 = vmul.f32 %v3005_v30, %v3967_v10  ;;  %v3006_v13 = vadd.f32 %v2059_v6, %v962_v11  ;;  %v2974_v9 = vpop.f32.mrb[11].mxu0 }
 0x204   : > { %2559 = vst [vmem:[%s3981_s23 + $0x8] sm:$0xff] %v2522_v32   ;;  %v2165_v12 = vadd.f32 %v3972_v62, %v2140_v5  ;;  %v2141_v8 = vmul.f32 %v3006_v13, %v3967_v10 }
 0x206   : > { %v2166_v40 = vadd.f32 %v3972_v62, %v2141_v8  ;;  %v2183_v35 = vmax.f32 %v2165_v12, 0.0 }
 0x207   : > { %v2064_v19 = vpop.f32.mrb[12].mxu0 }
 0x208   : > { %v2184_v22 = vmax.f32 %v2166_v40, 0.0  ;;  %v3007_v20 = vadd.f32 %v2064_v19, %v967_v2  ;;  %v2977_v21 = vpop.f32.mrb[13].mxu0 }
 0x209   : > { %v2067_v17 = vpop.f32.mrb[14].mxu0 }
 0x20a   : > { %v2527_v41 = vpack.c.bf16 %v2184_v22, %v2183_v35  ;;  %v2142_v23 = vmul.f32 %v3007_v20, %v3967_v10  ;;  %v3008_v28 = vadd.f32 %v2067_v17, %v970_v18  ;;  %v2978_v25 = vpop.f32.mrb[15].mxu0 }
 0x20c   : > { %2560 = vst [vmem:[%s3981_s23 + $0x10] sm:$0xff] %v2527_v41   ;;  %v2167_v56 = vadd.f32 %v3972_v62, %v2142_v23  ;;  %v2143_v7 = vmul.f32 %v3008_v28, %v3967_v10 }
 0x20d   : > { %v1232_v45 = vpop.f32.mrb[20].mxu1 }
 0x20e   : > { %v2833_v29 = vpop.f32.mrb[21].mxu1  ;;  %v2168_v33 = vadd.f32 %v3972_v62, %v2143_v7  ;;  %v2185_v2 = vmax.f32 %v2167_v56, 0.0 }
 0x20f   : > { %v1235_v34 = vpop.f32.mrb[22].mxu1  ;;  %v2072_v11 = vpop.f32.mrb[16].mxu0 }
 0x210   : > { %v2834_v52 = vpop.f32.mrb[23].mxu1  ;;  %v2186_v36 = vmax.f32 %v2168_v33, 0.0  ;;  %v3009_v37 = vadd.f32 %v2072_v11, %v3958_v38  ;;  %v2981_v59 = vpop.f32.mrb[17].mxu0 }
 0x211   : > { %v2075_v18 = vpop.f32.mrb[18].mxu0 }
 0x212   : > { %v2532_v39 = vpack.c.bf16 %v2186_v36, %v2185_v2  ;;  %v2144_v44 = vmul.f32 %v3009_v37, %v3967_v10  ;;  %v3010_v46 = vadd.f32 %v2075_v18, %v3960_v43  ;;  %v2982_v48 = vpop.f32.mrb[19].mxu0 }
 0x214   : > { %2561 = vst [vmem:[%s3981_s23 + $0x18] sm:$0xff] %v2532_v39   ;;  %v2169_v47 = vadd.f32 %v3972_v62, %v2144_v44  ;;  %v2145_v49 = vmul.f32 %v3010_v46, %v3967_v10 }
 0x215   : > { %v1240_v16 = vpop.f32.mrb[24].mxu1 }
 0x216   : > { %v2837_v50 = vpop.f32.mrb[25].mxu1  ;;  %v2170_v53 = vadd.f32 %v3972_v62, %v2145_v49  ;;  %v2187_v55 = vmax.f32 %v2169_v47, 0.0 }
 0x217   : > { %v1243_v51 = vpop.f32.mrb[26].mxu1  ;;  %v2080_v38 = vpop.f32.mrb[20].mxu0 }
 0x218   : > { %v2838_v54 = vpop.f32.mrb[27].mxu1  ;;  %v2188_v14 = vmax.f32 %v2170_v53, 0.0  ;;  %v3011_v15 = vadd.f32 %v2080_v38, %v1232_v45  ;;  %v2985_v24 = vpop.f32.mrb[21].mxu0 }
 0x219   : > { %v2083_v42 = vpop.f32.mrb[22].mxu0 }
 0x21a   : > { %v2537_v43 = vpack.c.bf16 %v2188_v14, %v2187_v55  ;;  %v2146_v57 = vmul.f32 %v3011_v15, %v3967_v10  ;;  %v3012_v58 = vadd.f32 %v2083_v42, %v1235_v34  ;;  %v2986_v60 = vpop.f32.mrb[23].mxu0 }
 0x21c   : > { %2562 = vst [vmem:[%s3981_s23 + $0x20] sm:$0xff] %v2537_v43   ;;  %v2171_v61 = vadd.f32 %v3972_v62, %v2146_v57  ;;  %v2147_v63 = vmul.f32 %v3012_v58, %v3967_v10 }
 0x21d   : > { %v1248_v27 = vpop.f32.mrb[28].mxu1 }
 0x21e   : > { %v2841_v26 = vpop.f32.mrb[29].mxu1  ;;  %v2172_v1 = vadd.f32 %v3972_v62, %v2147_v63  ;;  %v2189_v30 = vmax.f32 %v2171_v61, 0.0 }
 0x21f   : > { %v1251_v31 = vpop.f32.mrb[30].mxu1  ;;  %v2088_v0 = vpop.f32.mrb[24].mxu0 }
 0x220   : > { %v2842_v3 = vpop.f32.mrb[31].mxu1  ;;  %v2190_v4 = vmax.f32 %v2172_v1, 0.0  ;;  %v3013_v6 = vadd.f32 %v2088_v0, %v1240_v16  ;;  %v2989_v32 = vpop.f32.mrb[25].mxu0 }
 0x221   : > { %v2091_v5 = vpop.f32.mrb[26].mxu0 }
 0x222   : > { %v2542_v13 = vpack.c.bf16 %v2190_v4, %v2189_v30  ;;  %v2148_v9 = vmul.f32 %v3013_v6, %v3967_v10  ;;  %v3014_v12 = vadd.f32 %v2091_v5, %v1243_v51  ;;  %v2990_v8 = vpop.f32.mrb[27].mxu0 }
 0x224   : > { %2563 = vst [vmem:[%s3981_s23 + $0x28] sm:$0xff] %v2542_v13   ;;  %v2173_v40 = vadd.f32 %v3972_v62, %v2148_v9  ;;  %v2149_v19 = vmul.f32 %v3014_v12, %v3967_v10 }
 0x225   : > { %v1256_v35 = vpop.f32.mrb[32].mxu1 }
 0x226   : > { %v2845_v22 = vpop.f32.mrb[33].mxu1  ;;  %v2174_v20 = vadd.f32 %v3972_v62, %v2149_v19  ;;  %v2191_v23 = vmax.f32 %v2173_v40, 0.0 }
 0x227   : > { %v1259_v21 = vpop.f32.mrb[34].mxu1  ;;  %v2096_v17 = vpop.f32.mrb[28].mxu0 }
 0x228   : > { %v2846_v41 = vpop.f32.mrb[35].mxu1  ;;  %v2192_v28 = vmax.f32 %v2174_v20, 0.0  ;;  %v3015_v25 = vadd.f32 %v2096_v17, %v1248_v27  ;;  %v2993_v56 = vpop.f32.mrb[29].mxu0 }
 0x229   : > { %v2099_v7 = vpop.f32.mrb[30].mxu0 }
 0x22a   : > { %v2547_v45 = vpack.c.bf16 %v2192_v28, %v2191_v23  ;;  %v2150_v29 = vmul.f32 %v3015_v25, %v3967_v10  ;;  %v3016_v33 = vadd.f32 %v2099_v7, %v1251_v31  ;;  %v2994_v34 = vpop.f32.mrb[31].mxu0 }
 0x22c   : > { %2564 = vst [vmem:[%s3981_s23 + $0x30] sm:$0xff] %v2547_v45   ;;  %v2175_v11 = vadd.f32 %v3972_v62, %v2150_v29  ;;  %v2151_v52 = vmul.f32 %v3016_v33, %v3967_v10 }
 0x22e   : > { %v2176_v2 = vadd.f32 %v3972_v62, %v2151_v52  ;;  %v2193_v37 = vmax.f32 %v2175_v11, 0.0 }
 0x22f   : > { %v2104_v36 = vpop.f32.mrb[32].mxu0 }
 0x230   : > { %v2194_v59 = vmax.f32 %v2176_v2, 0.0  ;;  %v3017_v18 = vadd.f32 %v2104_v36, %v1256_v35  ;;  %v2997_v39 = vpop.f32.mrb[33].mxu0 }
 0x231   : > { %v2107_v44 = vpop.f32.mrb[34].mxu0 }
 0x232   : > { %v2552_v46 = vpack.c.bf16 %v2194_v59, %v2193_v37  ;;  %v2152_v48 = vmul.f32 %v3017_v18, %v3967_v10  ;;  %v3018_v47 = vadd.f32 %v2107_v44, %v1259_v21  ;;  %v2998_v49 = vpop.f32.mrb[35].mxu0 }
 0x234   : > { %2565 = vst [vmem:[%s3981_s23 + $0x38] sm:$0xff] %v2552_v46   ;;  %v2177_v16 = vadd.f32 %v3972_v62, %v2152_v48  ;;  %v2153_v50 = vmul.f32 %v3018_v47, %v3967_v10 }
 0x236   : > { %v2178_v53 = vadd.f32 %v3972_v62, %v2153_v50  ;;  %v2195_v51 = vmax.f32 %v2177_v16, 0.0 }
 0x238   : > { %v2196_v38 = vmax.f32 %v2178_v53, 0.0 }
 0x23a   : > { %v2557_v54 = vpack.c.bf16 %v2196_v38, %v2195_v51 }
 0x23c   : > { %2566 = vst [vmem:[%s3981_s23 + $0x40] sm:$0xff] %v2557_v54  }
 0x23d PF: > { %s14_s15 = sadd.s32 1, %s3322_s15  }
 0x23e   : > { %p11_p5 = scmp.ge.s32.totalorder %s14_s15, 6  }
 0x240   :  { %13 = sbr.rel (!%p11_p5) target bundleno = 1 (0x1), region = 74 }

</bundles_post_ra>
